<compile_context>
chip_gen: v7x
topology: tpu7x:2x2x1
jax: 0.10.0
libtpu: 0.0.40
codegen_flags: <defaults>
</compile_context>

<pallas_src>
import jax
import jax.numpy as jnp
from jax.experimental import pallas as pl
from jax.experimental.pallas import tpu as pltpu


def _round_up(n, m):
    return ((n + m - 1) // m) * m


def _mlp_kernel(xT_ref, w1_ref, b1_ref, w2_ref, b2_ref, w3_ref, b3_ref, o_ref):
    """One batch tile. Batch lives on the lane (last) axis throughout.

    xT_ref : (D_pad, TILE_B) bf16   input tile, transposed
    w1_ref : (H, D_pad)      bf16   lin1 weight (PyTorch (out, in) layout)
    b1_ref : (H, 1)          f32
    w2_ref : (H, H)          bf16   lin2 weight
    b2_ref : (H, 1)          f32
    w3_ref : (H, 1)          f32    final projection as a column
    b3_ref : (1, 1)          f32
    o_ref  : (1, TILE_B)     f32    lane-dense output row
    """
    # lin1 + ReLU  (MXU, f32 accumulate; bias broadcast over lanes)
    h = jnp.dot(w1_ref[...], xT_ref[...], preferred_element_type=jnp.float32)
    h = jnp.maximum(h + b1_ref[...], 0.0)
    # lin2 + ReLU
    h = jnp.dot(w2_ref[...], h.astype(jnp.bfloat16),
                preferred_element_type=jnp.float32)
    h = jnp.maximum(h + b2_ref[...], 0.0)
    # out: width-1 projection done on VPU (+ XLU sublane reduce) instead of a
    # wasted MXU pass; result is already lane-dense.
    out = jnp.sum(h * w3_ref[...], axis=0, keepdims=True) + b3_ref[...]
    o_ref[...] = out.astype(o_ref.dtype)


def utility_malloy_forward(x, params, tile_b=None):
    """Equivalent of UtilityMalloy.forward: x (batch, ...) -> (batch,)."""
    w1, b1, w2, b2, w3, b3 = params
    hidden = w1.shape[0]
    latent = w1.shape[1]

    batch = x.shape[0]
    x2d = x.reshape(batch, -1)                       # torch: x.view(B, -1)
    assert x2d.shape[1] == latent

    d_pad = _round_up(latent, 32)                    # align first contraction dim
    if tile_b is None:
        tile_b = min(512, _round_up(batch, 128))     # lane-dim batch tile
    b_pad = _round_up(batch, tile_b)
    grid = (b_pad // tile_b,)

    # Wrapper-side layout plumbing (plain XLA ops): pad, cast matmul operands to
    # bf16 and put batch on the lane axis so the kernel output is lane-dense.
    xT = jnp.zeros((d_pad, b_pad), jnp.bfloat16)
    xT = xT.at[:latent, :batch].set(x2d.astype(jnp.bfloat16).T)
    w1k = jnp.zeros((hidden, d_pad), jnp.bfloat16)
    w1k = w1k.at[:, :latent].set(w1.astype(jnp.bfloat16))
    w2k = w2.astype(jnp.bfloat16)
    b1k = b1.reshape(hidden, 1).astype(jnp.float32)
    b2k = b2.reshape(hidden, 1).astype(jnp.float32)
    w3k = w3.reshape(hidden, 1).astype(jnp.float32)
    b3k = b3.reshape(1, 1).astype(jnp.float32)

    flops = 2 * b_pad * (d_pad * hidden + hidden * hidden + hidden)
    bytes_accessed = (xT.size * 2 + w1k.size * 2 + w2k.size * 2
                      + (b1k.size + b2k.size + w3k.size + b3k.size) * 4
                      + b_pad * 4)

    out = pl.pallas_call(
        _mlp_kernel,
        out_shape=jax.ShapeDtypeStruct((1, b_pad), jnp.float32),
        grid_spec=pltpu.PrefetchScalarGridSpec(
            num_scalar_prefetch=0,
            grid=grid,
            in_specs=[
                pl.BlockSpec((d_pad, tile_b), lambda i: (0, i)),    # x^T streams
                pl.BlockSpec((hidden, d_pad), lambda i: (0, 0)),    # W1 resident
                pl.BlockSpec((hidden, 1), lambda i: (0, 0)),        # b1 resident
                pl.BlockSpec((hidden, hidden), lambda i: (0, 0)),   # W2 resident
                pl.BlockSpec((hidden, 1), lambda i: (0, 0)),        # b2 resident
                pl.BlockSpec((hidden, 1), lambda i: (0, 0)),        # w3 resident
                pl.BlockSpec((1, 1), lambda i: (0, 0)),             # b3 resident
            ],
            out_specs=pl.BlockSpec((1, tile_b), lambda i: (0, i)),  # lane-dense
        ),
        compiler_params=pltpu.CompilerParams(
            dimension_semantics=("parallel",)),  # v7x: shard batch tiles over 2 TCs
        cost_estimate=pl.CostEstimate(
            flops=flops, transcendentals=0, bytes_accessed=bytes_accessed),
    )(xT, w1k, b1k, w2k, b2k, w3k, b3k)

    # torch.flatten(self.out(x)) -> shape (batch,)
    return out.reshape(b_pad)[:batch]


def init_params(latent_dim=20, hidden_dim=64, key=jax.random.PRNGKey(0)):
    """PyTorch-default Linear init (uniform +-1/sqrt(fan_in)), (out, in) layout."""
    keys = jax.random.split(key, 6)

    def linear(kw, kb, fan_in, fan_out):
        bound = 1.0 / jnp.sqrt(jnp.float32(fan_in))
        w = jax.random.uniform(kw, (fan_out, fan_in), jnp.float32, -bound, bound)
        b = jax.random.uniform(kb, (fan_out,), jnp.float32, -bound, bound)
        return w, b

    w1, b1 = linear(keys[0], keys[1], latent_dim, hidden_dim)
    w2, b2 = linear(keys[2], keys[3], hidden_dim, hidden_dim)
    w3, b3 = linear(keys[4], keys[5], hidden_dim, 1)
    return (w1, b1, w2, b2, w3, b3)


def _reference(x, params):
    """Pure-JAX reference with the same bf16 operand casting / f32 accumulation."""
    w1, b1, w2, b2, w3, b3 = params
    x2d = x.reshape(x.shape[0], -1)
    h = jnp.dot(x2d.astype(jnp.bfloat16), w1.astype(jnp.bfloat16).T,
                preferred_element_type=jnp.float32) + b1
    h = jnp.maximum(h, 0.0)
    h = jnp.dot(h.astype(jnp.bfloat16), w2.astype(jnp.bfloat16).T,
                preferred_element_type=jnp.float32) + b2
    h = jnp.maximum(h, 0.0)
    return (jnp.dot(h, w3.T) + b3).reshape(-1)


if __name__ == "__main__":
    latent_dim = 20

    key = jax.random.PRNGKey(0)
    k_x1, k_x2, k_p = jax.random.split(key, 3)
    params = init_params(latent_dim=latent_dim, key=k_p)

    fwd = jax.jit(utility_malloy_forward)

    # Small, module-typical batch (mean + logvar of 10 Gaussians -> 20 dims).
    x_small = jax.random.normal(k_x1, (8, latent_dim), dtype=jnp.float32)
    out_small = jax.block_until_ready(fwd(x_small, params))
    assert out_small.shape == (8,)
    ref_small = _reference(x_small, params)
    assert jnp.allclose(out_small, ref_small, atol=1e-2, rtol=1e-2), (
        float(jnp.max(jnp.abs(out_small - ref_small))))

    # Streamed batch: exercises multiple grid steps with VMEM-resident weights.
    x_big = jax.random.normal(k_x2, (1000, latent_dim), dtype=jnp.float32)
    out_big = jax.block_until_ready(fwd(x_big, params))
    assert out_big.shape == (1000,)
    ref_big = _reference(x_big, params)
    assert jnp.allclose(out_big, ref_big, atol=1e-2, rtol=1e-2), (
        float(jnp.max(jnp.abs(out_big - ref_big))))

    print("KERNEL_OK")
</pallas_src>

<mosaic_0001>
module attributes {stable_mosaic.version = 11 : i64} {
  func.func @_mlp_kernel(%arg0: i32, %arg1: memref<32x128xbf16, #tpu.memory_space<vmem>>, %arg2: memref<64x32xbf16, #tpu.memory_space<vmem>>, %arg3: memref<64x1xf32, #tpu.memory_space<vmem>>, %arg4: memref<64x64xbf16, #tpu.memory_space<vmem>>, %arg5: memref<64x1xf32, #tpu.memory_space<vmem>>, %arg6: memref<64x1xf32, #tpu.memory_space<vmem>>, %arg7: memref<1x1xf32, #tpu.memory_space<vmem>>, %arg8: memref<1x128xf32, #tpu.memory_space<vmem>>) attributes {dimension_semantics = [#tpu.dimension_semantics<parallel>], iteration_bounds = array<i64: 1>, scalar_prefetch = 0 : i64, scratch_operands = 0 : i64, tpu.core_type = #tpu.core_type<tc>, window_params = [{transform_indices = @transform_0, window_bounds = array<i64: 32, 128>}, {pipeline_mode = #tpu.pipeline_mode<synchronous>, transform_indices = @transform_1, window_bounds = array<i64: 64, 32>}, {pipeline_mode = #tpu.pipeline_mode<synchronous>, transform_indices = @transform_2, window_bounds = array<i64: 64, 1>}, {pipeline_mode = #tpu.pipeline_mode<synchronous>, transform_indices = @transform_3, window_bounds = array<i64: 64, 64>}, {pipeline_mode = #tpu.pipeline_mode<synchronous>, transform_indices = @transform_4, window_bounds = array<i64: 64, 1>}, {pipeline_mode = #tpu.pipeline_mode<synchronous>, transform_indices = @transform_5, window_bounds = array<i64: 64, 1>}, {pipeline_mode = #tpu.pipeline_mode<synchronous>, transform_indices = @transform_6, window_bounds = array<i64: 1, 1>}, {transform_indices = @transform_7, window_bounds = array<i64: 1, 128>}]} {
    %c0 = arith.constant 0 : index
    %c0_0 = arith.constant 0 : index
    %0 = vector.load %arg2[%c0, %c0_0] : memref<64x32xbf16, #tpu.memory_space<vmem>>, vector<64x32xbf16>
    %c0_1 = arith.constant 0 : index
    %c0_2 = arith.constant 0 : index
    %1 = vector.load %arg1[%c0_1, %c0_2] : memref<32x128xbf16, #tpu.memory_space<vmem>>, vector<32x128xbf16>
    %cst = arith.constant dense<0.000000e+00> : vector<64x128xf32>
    %2 = tpu.matmul %0, %1, %cst {dimension_numbers = #tpu.dot_dimension_numbers<[1], [0], [0], [1], [0, 0, 1, 1], [], []>} : vector<64x32xbf16>, vector<32x128xbf16>, vector<64x128xf32> -> vector<64x128xf32>
    %c0_3 = arith.constant 0 : index
    %c0_4 = arith.constant 0 : index
    %3 = vector.load %arg3[%c0_3, %c0_4] : memref<64x1xf32, #tpu.memory_space<vmem>>, vector<64x1xf32>
    %4 = vector.broadcast %3 : vector<64x1xf32> to vector<64x128xf32>
    %5 = arith.addf %2, %4 : vector<64x128xf32>
    %cst_5 = arith.constant 0.000000e+00 : f32
    %6 = vector.broadcast %cst_5 : f32 to vector<64x128xf32>
    %7 = arith.maximumf %5, %6 : vector<64x128xf32>
    %c0_6 = arith.constant 0 : index
    %c0_7 = arith.constant 0 : index
    %8 = vector.load %arg4[%c0_6, %c0_7] : memref<64x64xbf16, #tpu.memory_space<vmem>>, vector<64x64xbf16>
    %9 = arith.truncf %7 : vector<64x128xf32> to vector<64x128xbf16>
    %cst_8 = arith.constant dense<0.000000e+00> : vector<64x128xf32>
    %10 = tpu.matmul %8, %9, %cst_8 {dimension_numbers = #tpu.dot_dimension_numbers<[1], [0], [0], [1], [0, 0, 1, 1], [], []>} : vector<64x64xbf16>, vector<64x128xbf16>, vector<64x128xf32> -> vector<64x128xf32>
    %c0_9 = arith.constant 0 : index
    %c0_10 = arith.constant 0 : index
    %11 = vector.load %arg5[%c0_9, %c0_10] : memref<64x1xf32, #tpu.memory_space<vmem>>, vector<64x1xf32>
    %12 = vector.broadcast %11 : vector<64x1xf32> to vector<64x128xf32>
    %13 = arith.addf %10, %12 : vector<64x128xf32>
    %cst_11 = arith.constant 0.000000e+00 : f32
    %14 = vector.broadcast %cst_11 : f32 to vector<64x128xf32>
    %15 = arith.maximumf %13, %14 : vector<64x128xf32>
    %c0_12 = arith.constant 0 : index
    %c0_13 = arith.constant 0 : index
    %16 = vector.load %arg6[%c0_12, %c0_13] : memref<64x1xf32, #tpu.memory_space<vmem>>, vector<64x1xf32>
    %17 = vector.broadcast %16 : vector<64x1xf32> to vector<64x128xf32>
    %18 = arith.mulf %15, %17 : vector<64x128xf32>
    %cst_14 = arith.constant dense<0.000000e+00> : vector<128xf32>
    %19 = vector.multi_reduction <add>, %18, %cst_14 [0] : vector<64x128xf32> to vector<128xf32>
    %20 = vector.shape_cast %19 : vector<128xf32> to vector<1x128xf32>
    %c0_15 = arith.constant 0 : index
    %c0_16 = arith.constant 0 : index
    %21 = vector.load %arg7[%c0_15, %c0_16] : memref<1x1xf32, #tpu.memory_space<vmem>>, vector<1x1xf32>
    %22 = vector.broadcast %21 : vector<1x1xf32> to vector<1x128xf32>
    %23 = arith.addf %20, %22 : vector<1x128xf32>
    %c0_17 = arith.constant 0 : index
    %c0_18 = arith.constant 0 : index
    %24 = vector.load %arg8[%c0_17, %c0_18] : memref<1x128xf32, #tpu.memory_space<vmem>>, vector<1x128xf32>
    tpu.vector_store %arg8[%c0_17, %c0_18], %23 {strides = array<i32>} : memref<1x128xf32, #tpu.memory_space<vmem>>, vector<1x128xf32>,
    return
  }
  func.func @transform_0(%arg0: i32) -> (i32, i32) {
    %c0_i32 = arith.constant 0 : i32
    %c0_i32_0 = arith.constant 0 : i32
    return %c0_i32, %arg0 : i32, i32
  }
  func.func @transform_1(%arg0: i32) -> (i32, i32) {
    %c0_i32 = arith.constant 0 : i32
    %c0_i32_0 = arith.constant 0 : i32
    %c0_i32_1 = arith.constant 0 : i32
    return %c0_i32, %c0_i32_0 : i32, i32
  }
  func.func @transform_2(%arg0: i32) -> (i32, i32) {
    %c0_i32 = arith.constant 0 : i32
    %c0_i32_0 = arith.constant 0 : i32
    %c0_i32_1 = arith.constant 0 : i32
    return %c0_i32, %c0_i32_0 : i32, i32
  }
  func.func @transform_3(%arg0: i32) -> (i32, i32) {
    %c0_i32 = arith.constant 0 : i32
    %c0_i32_0 = arith.constant 0 : i32
    %c0_i32_1 = arith.constant 0 : i32
    return %c0_i32, %c0_i32_0 : i32, i32
  }
  func.func @transform_4(%arg0: i32) -> (i32, i32) {
    %c0_i32 = arith.constant 0 : i32
    %c0_i32_0 = arith.constant 0 : i32
    %c0_i32_1 = arith.constant 0 : i32
    return %c0_i32, %c0_i32_0 : i32, i32
  }
  func.func @transform_5(%arg0: i32) -> (i32, i32) {
    %c0_i32 = arith.constant 0 : i32
    %c0_i32_0 = arith.constant 0 : i32
    %c0_i32_1 = arith.constant 0 : i32
    return %c0_i32, %c0_i32_0 : i32, i32
  }
  func.func @transform_6(%arg0: i32) -> (i32, i32) {
    %c0_i32 = arith.constant 0 : i32
    %c0_i32_0 = arith.constant 0 : i32
    %c0_i32_1 = arith.constant 0 : i32
    return %c0_i32, %c0_i32_0 : i32, i32
  }
  func.func @transform_7(%arg0: i32) -> (i32, i32) {
    %c0_i32 = arith.constant 0 : i32
    %c0_i32_0 = arith.constant 0 : i32
    return %c0_i32, %arg0 : i32, i32
  }
}

</mosaic_0001>

<bundles_post_ra>
// kernel: utility_malloy_forward.1
= control target key start
LH: loop header
LB: loop body
LE: loop exit
PB: predicated region body
PF: predicated region fallthrough
CT: control target
= control target key end

     0   :  { %v531_v1 = vmov 0   ;;  %vm121_vm0 = vcmask 261120   ;;  %vm287_vm1 = vcmask 523264   ;;  %s688_s0 = inlined_call_operand.vmem [shape: bf16[32,128], index: 0, kind: input, shape index: {}]   ;;  %s689_s1 = inlined_call_operand.vmem [shape: bf16[64,32], index: 1, kind: input, shape index: {}]   ;;  %s690_s6 = inlined_call_operand.<no memory space> [shape: f32[1,1], index: 6, kind: input, shape index: {}]   ;;  %s691_s2 = inlined_call_operand.vmem [shape: f32[64,1], index: 2, kind: input, shape index: {}]   ;;  %s692_s4 = inlined_call_operand.vmem [shape: f32[64,1], index: 4, kind: input, shape index: {}]   ;;  %s693_s5 = inlined_call_operand.vmem [shape: f32[64,1], index: 5, kind: input, shape index: {}]   ;;  %s694_s3 = inlined_call_operand.vmem [shape: bf16[64,64], index: 3, kind: input, shape index: {}]   ;;  %s695_s7 = inlined_call_operand.vmem [shape: f32[1,128], index: 7, kind: output, shape index: {}]  }
   0x1   :  { %v521_v0 = vld [vmem:[%s688_s0] sm:$0xff]   ;;  %519 = vset.pattern.permute.xlu0 %v531_v1  ;;  %520 = vset.pattern.permute.xlu1 %v531_v1  ;;  %v12_v2 = vstv %s690_s6  ;;  %v522_v3 = vld [vmem:[%s688_s0 + $0x8] sm:$0xff]   ;;  %v43_v7 = vld [vmem:[%s691_s2 + $0x10] sm:$0xff] }
   0x2   :  { %13 = vst [vmem:[#allocation2] sm:$0x1] %v12_v2  ;;  %490 = vmatprep.subr.bf16.mxu0 %v521_v0  ;;  %v523_v4 = vld [vmem:[%s689_s1] sm:$0xff]   ;;  %v524_v5 = vld [vmem:[%s689_s1 + $0x8] sm:$0xff]   ;;  %v525_v8 = vld [vmem:[%s689_s1 + $0x10] sm:$0xff]   ;;  %61 = vperm.xlu1 %520, %v43_v7  }
   0x3   :  { %491 = vmatpush3.bf16.msra.mxu0 %v521_v0  ;;  %494 = vmatprep.mubr.msk.bf16.mxu0 %vm121_vm0, %v523_v4  ;;  %v41_v6 = vld [vmem:[%s691_s2] sm:$0xff]  ;;  %v42_v9 = vld [vmem:[%s691_s2 + $0x8] sm:$0xff]  ;;  %v44_v10 = vld [vmem:[%s691_s2 + $0x18] sm:$0xff] }
   0x4   :  { %492 = vmatprep.subr.bf16.mxu0 %v522_v3  ;;  %51 = vperm.xlu0 %519, %v41_v6   ;;  %v45_v11 = vld [vmem:[%s691_s2 + $0x20] sm:$0xff]  ;;  %v46_v12 = vld [vmem:[%s691_s2 + $0x28] sm:$0xff]  ;;  %v526_v13 = vld [vmem:[%s689_s1 + $0x18] sm:$0xff]  }
   0x5   :  { %v47_v14 = vld [vmem:[%s691_s2 + $0x30] sm:$0xff]  ;;  %v48_v15 = vld [vmem:[%s691_s2 + $0x38] sm:$0xff]  ;;  %v219_v16 = vld [vmem:[%s692_s4] sm:$0xff] }
   0x6   :  { %66 = vperm.xlu1 %520, %v44_v10   ;;  %v220_v17 = vld [vmem:[%s692_s4 + $0x8] sm:$0xff]  ;;  %v221_v18 = vld [vmem:[%s692_s4 + $0x10] sm:$0xff]  ;;  %v222_v19 = vld [vmem:[%s692_s4 + $0x18] sm:$0xff] }
   0x7   :  { %493 = vmatpush3.bf16.msra.mxu0 %v522_v3  ;;  %v373_v20 = vld [vmem:[%s693_s5] sm:$0xff]  ;;  %v374_v21 = vld [vmem:[%s693_s5 + $0x8] sm:$0xff]  ;;  %v375_v23 = vld [vmem:[%s693_s5 + $0x10] sm:$0xff] }
   0x8   :  { %56 = vperm.xlu0 %519, %v42_v9   ;;  %v223_v22 = vld [vmem:[%s692_s4 + $0x20] sm:$0xff]  ;;  %v224_v24 = vld [vmem:[%s692_s4 + $0x28] sm:$0xff]  ;;  %v376_v25 = vld [vmem:[%s693_s5 + $0x18] sm:$0xff] }
   0x9   :  { %v225_v26 = vld [vmem:[%s692_s4 + $0x30] sm:$0xff]  ;;  %v377_v27 = vld [vmem:[%s693_s5 + $0x20] sm:$0xff]  ;;  %v226_v28 = vld [vmem:[%s692_s4 + $0x38] sm:$0xff] }
   0xa   :  { %495 = vmatmul.mubr.msk.bf16.vlgmr.msra.gmra.mrb[0].mxu0 %vm121_vm0, %v524_v5  ;;  %76 = vperm.xlu1 %520, %v46_v12   ;;  %v378_v29 = vld [vmem:[%s693_s5 + $0x28] sm:$0xff]  ;;  %v379_v30 = vld [vmem:[%s693_s5 + $0x30] sm:$0xff]  ;;  %v380_v31 = vld [vmem:[%s693_s5 + $0x38] sm:$0xff] }
   0xb   :  { %498 = vmatprep.mubr.msk.bf16.mxu0 %vm121_vm0, %v525_v8  ;;  %v442_v32 = vld [vmem:[#allocation2] sm:$0x1]  ;;  %v528_v6 = vld [vmem:[%s694_s3 + $0x8] sm:$0xff]   ;;  %v529_v7 = vld [vmem:[%s694_s3 + $0x10] sm:$0xff]  }
   0xc   :  { %71 = vperm.xlu0 %519, %v45_v11   ;;  %v527_v33 = vld [vmem:[%s694_s3] sm:$0xff]   ;;  %v530_v8 = vld [vmem:[%s694_s3 + $0x18] sm:$0xff]  }
   0xd   :  { %510 = vmatprep.mubr.msk.bf16.mxu1 %vm287_vm1, %v527_v33 }
   0xe   :  { %86 = vperm.xlu1 %520, %v48_v15  }
  0x10   :  { %81 = vperm.xlu0 %519, %v47_v14  }
  0x12   :  { %499 = vmatmul.mubr.msk.bf16.gmra.mrb[4].mxu0 %vm121_vm0, %v526_v13  ;;  %234 = vperm.xlu1 %520, %v220_v17  }
  0x14   :  { %229 = vperm.xlu0 %519, %v219_v16  }
  0x16   :  { %244 = vperm.xlu1 %520, %v222_v19  }
  0x18   :  { %239 = vperm.xlu0 %519, %v221_v18  }
  0x1a   :  { %388 = vperm.xlu1 %520, %v374_v21  }
  0x1c   :  { %383 = vperm.xlu0 %519, %v373_v20  }
  0x1e   :  { %393 = vperm.xlu1 %520, %v375_v23  }
  0x20   :  { %249 = vperm.xlu0 %519, %v223_v22  }
  0x22   :  { %398 = vperm.xlu1 %520, %v376_v25  }
  0x24   :  { %254 = vperm.xlu0 %519, %v224_v24  }
  0x26   :  { %403 = vperm.xlu1 %520, %v377_v27  }
  0x28   :  { %259 = vperm.xlu0 %519, %v225_v26  }
  0x2a   :  { %408 = vperm.xlu1 %520, %v378_v29  }
  0x2c   :  { %264 = vperm.xlu0 %519, %v226_v28  }
  0x2e   :  { %418 = vperm.xlu1 %520, %v380_v31  }
  0x30   :  { %413 = vperm.xlu0 %519, %v379_v30  }
  0x34   :  { %445 = vperm.xlu0 %519, %v442_v32  }
  0x81   :  { %v62_v35 = vpop.permute.xlu1 %61 }
  0x83   :  { %v52_v34 = vpop.permute.xlu0 %51 }
  0x85   :  { %v67_v37 = vpop.permute.xlu1 %66 }
  0x87   :  { %v57_v36 = vpop.permute.xlu0 %56 }
  0x89   :  { %v77_v46 = vpop.permute.xlu1 %76 }
  0x8b   :  { %v72_v41 = vpop.permute.xlu0 %71 }
  0x8d   :  { %v87_v58 = vpop.permute.xlu1 %86 }
  0x8f   :  { %v82_v53 = vpop.permute.xlu0 %81 }
  0x91   :  { %v235_v10 = vpop.permute.xlu1 %234 }
  0x93   :  { %v230_v9 = vpop.permute.xlu0 %229 }
  0x95   :  { %v245_v12 = vpop.permute.xlu1 %244 }
  0x97   :  { %v240_v11 = vpop.permute.xlu0 %239 }
  0x99   :  { %v389_v14 = vpop.permute.xlu1 %388 }
  0x9b   :  { %v384_v13 = vpop.permute.xlu0 %383 }
  0x9d   :  { %v394_v16 = vpop.permute.xlu1 %393 }
  0x9f   :  { %v250_v15 = vpop.permute.xlu0 %249 }
  0xa1   :  { %v399_v19 = vpop.permute.xlu1 %398 }
  0xa3   :  { %v255_v17 = vpop.permute.xlu0 %254 }
  0xa5   :  { %v404_v31 = vpop.permute.xlu1 %403 }
  0xa7   :  { %v260_v28 = vpop.permute.xlu0 %259 }
  0xdd   :  { %v496_v38 = vpop.f32.mrb[0].mxu0 }
  0xde   :  { %v177_v39 = vadd.f32 %v496_v38, %v62_v35  ;;  %v168_v40 = vpop.f32.mrb[1].mxu0 }
  0xdf   :  { %v169_v42 = vadd.f32 %v168_v40, %v52_v34  ;;  %v497_v43 = vpop.f32.mrb[2].mxu0 }
  0xe0   :  { %v180_v44 = vadd.f32 %v497_v43, %v67_v37  ;;  %v171_v45 = vpop.f32.mrb[3].mxu0  ;;  %v201_v48 = vmax.f32 %v177_v39, 0.0 }
  0xe1   :  { %v172_v47 = vadd.f32 %v171_v45, %v57_v36  ;;  %v199_v50 = vmax.f32 %v169_v42, 0.0  ;;  %v265_v42 = vpop.permute.xlu0 %264 }
  0xe2   :  { %v202_v49 = vmax.f32 %v180_v44, 0.0 }
  0xe3   :  { %v200_v51 = vmax.f32 %v172_v47, 0.0 }
  0xe4   :  { %v216_v52 = vpack.c.bf16 %v202_v49, %v201_v48  ;;  %v409_v49 = vpop.permute.xlu1 %408 }
  0xe5   :  { %v500_v54 = vpop.f32.mrb[4].mxu0  ;;  %v215_v55 = vpack.c.bf16 %v200_v51, %v199_v50 }
  0xe6   :  { %v193_v56 = vadd.f32 %v500_v54, %v82_v53  ;;  %v184_v57 = vpop.f32.mrb[5].mxu0 }
  0xe7   :  { %v185_v59 = vadd.f32 %v184_v57, %v72_v41  ;;  %v501_v60 = vpop.f32.mrb[6].mxu0  ;;  %502 = vmatprep.subr.bf16.mxu1 %v215_v55  ;;  %v414_v57 = vpop.permute.xlu0 %413 }
  0xe8   :  { %v196_v61 = vadd.f32 %v501_v60, %v87_v58  ;;  %v187_v62 = vpop.f32.mrb[7].mxu0  ;;  %503 = vmatpush3.bf16.msra.mxu1 %v215_v55  ;;  %v205_v0 = vmax.f32 %v193_v56, 0.0  ;;  %v419_v60 = vpop.permute.xlu1 %418 }
  0xe9   :  { %v188_v63 = vadd.f32 %v187_v62, %v77_v46  ;;  %504 = vmatprep.subr.bf16.mxu1 %v216_v52  ;;  %v203_v2 = vmax.f32 %v185_v59, 0.0 }
  0xea   :  { %v206_v1 = vmax.f32 %v196_v61, 0.0 }
  0xeb   :  { %v204_v3 = vmax.f32 %v188_v63, 0.0  ;;  %v448_v63 = vlaneseq }
  0xec   :  { %v218_v4 = vpack.c.bf16 %v206_v1, %v205_v0  ;;  %505 = vmatpush3.bf16.msra.mxu1 %v216_v52 }
  0xed   :  { %v217_v5 = vpack.c.bf16 %v204_v3, %v203_v2  ;;  %v449_v2 = vshrl.u32 %v448_v63, 7 }
  0xef   :  { %506 = vmatprep.subr.bf16.mxu1 %v217_v5 }
  0xf0   :  { %507 = vmatpush3.bf16.msra.mxu1 %v217_v5  ;;  %v450_v5 = vsub.s32 0, %v449_v2 }
  0xf1   :  { %508 = vmatprep.subr.bf16.mxu1 %v218_v4 }
  0xf4   :  { %509 = vmatpush3.bf16.msra.mxu1 %v218_v4 }
  0xf7   :  { %511 = vmatmul.mubr.msk.bf16.vlgmr.msra.gmra.mrb[0].mxu1 %vm287_vm1, %v528_v6 }
  0xf8   :  { %514 = vmatprep.mubr.msk.bf16.mxu1 %vm287_vm1, %v529_v7  ;;  %v446_v7 = vpop.permute.xlu0 %445 }
  0xff   :  { %515 = vmatmul.mubr.msk.bf16.gmra.mrb[4].mxu1 %vm287_vm1, %v530_v8 }
 0x1ca   :  { %v512_v18 = vpop.f32.mrb[0].mxu1 }
 0x1cb   :  { %v334_v20 = vpop.f32.mrb[1].mxu1  ;;  %v343_v21 = vadd.f32 %v512_v18, %v240_v11 }
 0x1cc   :  { %v335_v22 = vadd.f32 %v334_v20, %v230_v9  ;;  %v513_v23 = vpop.f32.mrb[2].mxu1  ;;  %v451_v9 = vrot.slane %v446_v7, %v450_v5 }
 0x1cd   :  { %v346_v24 = vadd.f32 %v513_v23, %v245_v12  ;;  %v337_v25 = vpop.f32.mrb[3].mxu1  ;;  %v367_v29 = vmax.f32 %v343_v21, 0.0 }
 0x1ce   :  { %v365_v26 = vmax.f32 %v335_v22, 0.0  ;;  %v338_v27 = vadd.f32 %v337_v25, %v235_v10 }
 0x1cf   :  { %v368_v32 = vmax.f32 %v346_v24, 0.0  ;;  %v423_v37 = vmul.f32 %v394_v16, %v367_v29 }
 0x1d0   :  { %v366_v30 = vmax.f32 %v338_v27, 0.0  ;;  %v421_v33 = vmul.f32 %v384_v13, %v365_v26 }
 0x1d1   :  { %v424_v43 = vmul.f32 %v399_v19, %v368_v32 }
 0x1d2   :  { %v422_v34 = vmul.f32 %v389_v14, %v366_v30  ;;  %v516_v35 = vpop.f32.mrb[4].mxu1 }
 0x1d3   :  { %v350_v36 = vpop.f32.mrb[5].mxu1  ;;  %v359_v39 = vadd.f32 %v516_v35, %v260_v28 }
 0x1d4   :  { %v429_v38 = vadd.f32 %v422_v34, %v421_v33  ;;  %v351_v40 = vadd.f32 %v350_v36, %v250_v15  ;;  %v517_v41 = vpop.f32.mrb[6].mxu1 }
 0x1d5   :  { %v353_v44 = vpop.f32.mrb[7].mxu1  ;;  %v362_v47 = vadd.f32 %v517_v41, %v265_v42  ;;  %v371_v50 = vmax.f32 %v359_v39, 0.0 }
 0x1d6   :  { %v430_v45 = vadd.f32 %v429_v38, %v423_v37  ;;  %v369_v46 = vmax.f32 %v351_v40, 0.0  ;;  %v354_v48 = vadd.f32 %v353_v44, %v255_v17 }
 0x1d7   :  { %v372_v55 = vmax.f32 %v362_v47, 0.0  ;;  %v427_v58 = vmul.f32 %v414_v57, %v371_v50 }
 0x1d8   :  { %v425_v51 = vmul.f32 %v404_v31, %v369_v46  ;;  %v431_v52 = vadd.f32 %v430_v45, %v424_v43  ;;  %v370_v53 = vmax.f32 %v354_v48, 0.0 }
 0x1d9   :  { %v428_v61 = vmul.f32 %v419_v60, %v372_v55 }
 0x1da   :  { %v432_v54 = vadd.f32 %v431_v52, %v425_v51  ;;  %v426_v56 = vmul.f32 %v409_v49, %v370_v53 }
 0x1dc   :  { %v433_v59 = vadd.f32 %v432_v54, %v426_v56 }
 0x1de   :  { %v434_v62 = vadd.f32 %v433_v59, %v427_v58 }
 0x1e0   :  { %v435_v0 = vadd.f32 %v434_v62, %v428_v61 }
 0x1e2   :  { %v436_v1 = vrot.slane %v435_v0, 4 }
 0x1e4   :  { %v437_v3 = vadd.f32 %v436_v1, %v435_v0 }
 0x1e6   :  { %v438_v4 = vrot.slane %v437_v3, 2 }
 0x1e8   :  { %v439_v6 = vadd.f32 %v438_v4, %v437_v3 }
 0x1ea   :  { %v440_v8 = vrot.slane %v439_v6, 1 }
 0x1ec   :  { %v441_v10 = vadd.f32 %v440_v8, %v439_v6 }
 0x1ee   :  { %v452_v11 = vadd.f32 %v451_v9, %v441_v10 }
 0x1f0   :  { %453 = vst [vmem:[%s695_s7] sm:$0x1] %v452_v11 }

</bundles_post_ra>
